<compile_context>
chip_gen: v7x
topology: tpu7x:2x2x1
jax: 0.10.0
libtpu: 0.0.40
codegen_flags: <defaults>
</compile_context>

<pallas_src>
import jax
import jax.numpy as jnp
from jax.experimental import pallas as pl
from jax.experimental.pallas import tpu as pltpu


def _channel_attn_kernel(w_ref, x_ref, o_ref):
    # w_ref: SMEM, shape (2,) float32  -> [w_avg, w_max] (the 1x1 conv weights)
    # x_ref: VMEM, shape (TB, HW)      -> TB images, each flattened to one row
    # o_ref: VMEM, shape (TB, HW)
    x = x_ref[...].astype(jnp.float32)
    hw = x.shape[-1]  # full H*W (spatial dims are never tiled), correct mean divisor

    # Per-row (per-image) global average and max pool, fused on a single load.
    avg = jnp.sum(x, axis=-1, keepdims=True) * (1.0 / jnp.float32(hw))  # (TB, 1)
    mx = jnp.max(x, axis=-1, keepdims=True)                             # (TB, 1)

    # 1x1 conv over the 2 pooled "channels" (no bias), then sigmoid.
    s = w_ref[0] * avg + w_ref[1] * mx                                  # (TB, 1)
    gate = jax.nn.sigmoid(s)

    # Broadcast-multiply the per-image attention scalar back onto the rows.
    o_ref[...] = (x * gate).astype(o_ref.dtype)


def channel_attention_module(x, conv_weight, *, target_block_bytes=8 << 20):
    """x: (N, 1, H, W); conv_weight: (1, 2, 1, 1) (Conv2d(2, 1, 1, bias=False) weight)."""
    assert x.ndim == 4 and x.shape[1] == 1, "forward requires C == 1 (fc has in_channels=2)"
    n, _, h, w = x.shape
    hw = h * w
    itemsize = jnp.dtype(x.dtype).itemsize

    # Lane-dense layout: one image per row, spatial flattened onto the lane axis.
    x2 = x.reshape(n, hw)
    w_flat = conv_weight.reshape(2).astype(jnp.float32)

    # Pick a batch tile: as many rows as fit the per-block byte budget.
    row_bytes = hw * itemsize
    target_rows = max(1, target_block_bytes // row_bytes)
    if n <= target_rows:
        tb = n                      # full batch in one block (block dim == array dim is legal)
        n_pad = n
    else:
        tb = max(8, (target_rows // 8) * 8)   # sublane-aligned batch tile
        n_pad = ((n + tb - 1) // tb) * tb
        if n_pad != n:
            x2 = jnp.pad(x2, ((0, n_pad - n), (0, 0)))

    grid = (n_pad // tb,)

    out = pl.pallas_call(
        _channel_attn_kernel,
        out_shape=jax.ShapeDtypeStruct((n_pad, hw), x.dtype),
        grid=grid,
        in_specs=[
            pl.BlockSpec(memory_space=pltpu.MemorySpace.SMEM),   # conv weights (2 scalars)
            pl.BlockSpec((tb, hw), lambda i: (i, 0)),            # TB images / step, lane-dense
        ],
        out_specs=pl.BlockSpec((tb, hw), lambda i: (i, 0)),
        compiler_params=pltpu.CompilerParams(
            dimension_semantics=("parallel",),       # megacore sharding on v7x
            vmem_limit_bytes=48 << 20,               # above v5e's 16 MiB default, under v7x's 64 MiB
        ),
        cost_estimate=pl.CostEstimate(
            flops=3 * n_pad * hw,                    # sum + max + scale
            transcendentals=n_pad,                   # one sigmoid per image
            bytes_accessed=2 * n_pad * hw * itemsize,
        ),
    )(w_flat, x2)

    if n_pad != n:
        out = out[:n]
    return out.reshape(n, 1, h, w)


def _reference(x, conv_weight):
    # Pure-JAX reference mirroring the PyTorch forward.
    avg = jnp.mean(x, axis=(2, 3), keepdims=True)          # (N, 1, 1, 1)
    mx = jnp.max(x, axis=(2, 3), keepdims=True)            # (N, 1, 1, 1)
    cat = jnp.concatenate([avg, mx], axis=1)                # (N, 2, 1, 1)
    w = conv_weight.reshape(1, 2)                           # (out=1, in=2)
    s = jnp.einsum("oc,ncij->noij", w, cat)                 # (N, 1, 1, 1)
    gate = jax.nn.sigmoid(s)
    return x * gate


if __name__ == "__main__":
    key = jax.random.PRNGKey(0)
    kx, kw = jax.random.split(key)

    N, C, H, W = 2, 1, 16, 16
    x = jax.random.normal(kx, (N, C, H, W), dtype=jnp.float32)

    # Deterministic init of Conv2d(2, 1, 1, bias=False) weight: shape (1, 2, 1, 1).
    bound = 1.0 / jnp.sqrt(2.0)
    conv_weight = jax.random.uniform(
        kw, (1, 2, 1, 1), dtype=jnp.float32, minval=-bound, maxval=bound
    )

    out = channel_attention_module(x, conv_weight)
    out = jax.block_until_ready(out)

    ref = _reference(x, conv_weight)
    assert out.shape == (N, C, H, W)
    assert jnp.allclose(out, ref, atol=1e-5, rtol=1e-5), "mismatch vs reference"

    print("KERNEL_OK")
</pallas_src>

<mosaic_0001>
module attributes {stable_mosaic.version = 11 : i64} {
  func.func @_channel_attn_kernel(%arg0: i32, %arg1: memref<2xf32, #tpu.memory_space<smem>>, %arg2: memref<2x256xf32, #tpu.memory_space<vmem>>, %arg3: memref<2x256xf32, #tpu.memory_space<vmem>>) attributes {dimension_semantics = [#tpu.dimension_semantics<parallel>], iteration_bounds = array<i64: 1>, scalar_prefetch = 0 : i64, scratch_operands = 0 : i64, tpu.core_type = #tpu.core_type<tc>, window_params = [{transform_indices = @transform_0, window_bounds = array<i64: 2>}, {transform_indices = @transform_1, window_bounds = array<i64: 2, 256>}, {transform_indices = @transform_2, window_bounds = array<i64: 2, 256>}]} {
    %c0 = arith.constant 0 : index
    %c0_0 = arith.constant 0 : index
    %0 = vector.load %arg2[%c0, %c0_0] : memref<2x256xf32, #tpu.memory_space<vmem>>, vector<2x256xf32>
    %cst = arith.constant dense<0.000000e+00> : vector<2xf32>
    %1 = vector.multi_reduction <add>, %0, %cst [1] : vector<2x256xf32> to vector<2xf32>
    %2 = vector.shape_cast %1 : vector<2xf32> to vector<2x1xf32>
    %cst_1 = arith.constant 1.000000e+00 : f32
    %cst_2 = arith.constant 2.560000e+02 : f32
    %3 = arith.divf %cst_1, %cst_2 : f32
    %4 = vector.broadcast %3 : f32 to vector<2x1xf32>
    %5 = arith.mulf %2, %4 : vector<2x1xf32>
    %cst_3 = arith.constant dense<0xFF800000> : vector<2xf32>
    %6 = vector.multi_reduction <maximumf>, %0, %cst_3 [1] : vector<2x256xf32> to vector<2xf32>
    %7 = vector.shape_cast %6 : vector<2xf32> to vector<2x1xf32>
    %c0_4 = arith.constant 0 : index
    %8 = memref.load %arg1[%c0_4] : memref<2xf32, #tpu.memory_space<smem>>
    %9 = vector.broadcast %8 : f32 to vector<2x1xf32>
    %10 = arith.mulf %9, %5 : vector<2x1xf32>
    %c1 = arith.constant 1 : index
    %11 = memref.load %arg1[%c1] : memref<2xf32, #tpu.memory_space<smem>>
    %12 = vector.broadcast %11 : f32 to vector<2x1xf32>
    %13 = arith.mulf %12, %7 : vector<2x1xf32>
    %14 = arith.addf %10, %13 : vector<2x1xf32>
    %15 = arith.negf %14 : vector<2x1xf32>
    %16 = math.exp %15 : vector<2x1xf32>
    %cst_5 = arith.constant 1.000000e+00 : f32
    %17 = vector.broadcast %cst_5 : f32 to vector<2x1xf32>
    %18 = arith.addf %17, %16 : vector<2x1xf32>
    %19 = arith.divf %17, %18 : vector<2x1xf32>
    %20 = vector.broadcast %19 : vector<2x1xf32> to vector<2x256xf32>
    %21 = arith.mulf %0, %20 : vector<2x256xf32>
    %c0_6 = arith.constant 0 : index
    %c0_7 = arith.constant 0 : index
    %22 = vector.load %arg3[%c0_6, %c0_7] : memref<2x256xf32, #tpu.memory_space<vmem>>, vector<2x256xf32>
    tpu.vector_store %arg3[%c0_6, %c0_7], %21 {strides = array<i32>} : memref<2x256xf32, #tpu.memory_space<vmem>>, vector<2x256xf32>,
    return
  }
  func.func @transform_0(%arg0: i32) -> i32 {
    %c0_i32 = arith.constant 0 : i32
    %c0_i32_0 = arith.constant 0 : i32
    return %c0_i32 : i32
  }
  func.func @transform_1(%arg0: i32) -> (i32, i32) {
    %c0_i32 = arith.constant 0 : i32
    %c0_i32_0 = arith.constant 0 : i32
    return %arg0, %c0_i32 : i32, i32
  }
  func.func @transform_2(%arg0: i32) -> (i32, i32) {
    %c0_i32 = arith.constant 0 : i32
    %c0_i32_0 = arith.constant 0 : i32
    return %arg0, %c0_i32 : i32, i32
  }
}

</mosaic_0001>

<bundles_post_ra>
// kernel: tpu_custom_call.1
= control target key start
LH: loop header
LB: loop body
LE: loop exit
PB: predicated region body
PF: predicated region fallthrough
CT: control target
= control target key end

     0   :  { %7 = vsyncpa [#allocation5], 0  ;;  %s226_s0 = inlined_call_operand.hbm [shape: f32[2], index: 0, kind: input, shape index: {}]   ;;  %s227_s1 = inlined_call_operand.hbm [shape: f32[2,256], index: 1, kind: input, shape index: {}]   ;;  %s228_s2 = inlined_call_operand.hbm [shape: f32[2,256], index: 2, kind: output, shape index: {}]  }
   0x1   :  { %8 = vsyncpa [#allocation3], 0 }
   0x2   :  { %9 = vsyncpa [#allocation4], 0  ;;  %s110_s11 = scalar_lea.hbm %s226_s0, 16 }
   0x3   :  { %p111_p0 = scmp.ne.s32.totalorder %s226_s0, %s110_s11  ;;  %p114_p1 = scmp.lt.u32.totalorder %s110_s11, %s226_s0 }
   0x5   :  { %p116_p2 = pnand %p114_p1, %p111_p0 }
   0x7   :  { %119 = shalt.err (!%p116_p2)
}
   0x8   :  { %s170_s16 = smov [#allocation2]   ;;  %s171_s19 = smov [#allocation6]  }
   0x9   :  { %17 = dma.hbm_to_smem %s226_s0, 16, %s170_s16, [#allocation5]  }
   0xa   :  { %s24_s20 = sshll.u32 %s171_s19, 4  ;;  %s120_s23 = scalar_lea.hbm %s227_s1, 64  ;;  %s25_s20 = int_to_ptr.vmem [resolvable:$true] %s24_s20 }
   0xb   :  { %p121_p3 = scmp.ne.s32.totalorder %s227_s1, %s120_s23  ;;  %p124_p4 = scmp.lt.u32.totalorder %s120_s23, %s227_s1 }
   0xd   :  { %p126_p5 = pnand %p124_p4, %p121_p3 }
   0xf   :  { %129 = shalt.err (!%p126_p5)
}
  0x10   :  { %s130_s28 = scalar_lea.vmem %s25_s20, 64  ;;  %p135_p7 = scmp.lt.s32.totalorder %s25_s20, %s25_s20 }
  0x11   :  { %p131_p6 = scmp.ne.s32.totalorder %s25_s20, %s130_s28  ;;  %p136_p8 = scmp.lt.s32.totalorder %s130_s28, %s130_s28 }
  0x13   :  { %p137_p9 = por %p136_p8, %p135_p7 }
  0x15   :  { %p138_p10 = pnand %p137_p9, %p131_p6 }
  0x17   :  { %141 = shalt.err (!%p138_p10)
}
  0x18   :  { %27 = dma.hbm_to_vmem [thread:$0]  %s227_s1, 64, %s25_s20, [#allocation3]  }
  0x19   :  { %164 = dma.done.wait [#allocation5], 16  }
  0x1a   :  { %165 = vsyncadd [#allocation5], 4294967280 }
  0x1b   :  { %166 = dma.done.wait [#allocation3], 64  }
  0x1c   :  { %167 = vsyncadd [#allocation3], 4294967232 }
  0x1d   :  { %34 = sfence }
  0x1e   :  { %v40_v0 = vlaneseq  ;;  %v172_v1 = vmov 1983009808   ;;  %v35_v5 = vld [vmem:[#allocation6] sm:$0xf]  ;;  %vm47_vm0 = vcmask 1041408   ;;  %s59_s1 = sld [smem:[#allocation2]] }
  0x1f   :  { %v38_v2 = vunpack.c.l.s4 %v172_v1  ;;  %s99_s30 = sld [smem:[#allocation2 + $0x1]]  ;;  %v173_v26 = vmov 269488144   ;;  %s174_s3 = smov [#allocation7]  }
  0x20   :  { %v41_v3 = vshrl.u32 %v40_v0, 7  ;;  %v74_v27 = vunpack.c.l.s4 %v173_v26  ;;  %s89_s4 = sshll.u32 %s174_s3, 4  ;;  %s90_s4 = int_to_ptr.vmem [resolvable:$true] %s89_s4 }
  0x21   :  { %v39_v4 = vunpack.c.0.s8 %v38_v2  ;;  %s142_s5 = scalar_lea.vmem %s90_s4, 64  ;;  %p147_p12 = scmp.lt.s32.totalorder %s90_s4, %s90_s4 }
  0x22   :  { %v75_v28 = vunpack.c.0.s8 %v74_v27  ;;  %p143_p11 = scmp.ne.s32.totalorder %s90_s4, %s142_s5  ;;  %p148_p13 = scmp.lt.s32.totalorder %s142_s5, %s142_s5 }
  0x23   :  { %v42_v6 = vsub.s32 %v39_v4, %v41_v3 }
  0x24   :  { %v60_v17 = vstv %s59_s1  ;;  %v78_v29 = vsub.s32 %v75_v28, %v41_v3  ;;  %p149_p0 = por %p148_p13, %p147_p12 }
  0x25   :  { %v43_v7 = vrot.slane %v35_v5, %v42_v6  ;;  %v63_v18 = vstv %s99_s30 }
  0x26   :  { %p150_p1 = pnand %p149_p0, %p143_p11 }
  0x27   :  { %v44_v8 = vcombine.high %v43_v7, %v43_v7  ;;  %v48_v9 = vsel %vm47_vm0, %v43_v7, 0.0  ;;  %v54_v11 = vsel %vm47_vm0, %v43_v7, -inf }
  0x29   :  { %v49_v10 = vsel %vm47_vm0, %v44_v8, 0.0  ;;  %v55_v12 = vsel %vm47_vm0, %v44_v8, -inf }
  0x2a   :  { %v50_v13 = vadd.f32 %v49_v10, %v48_v9  ;;  %v56_v14 = vmax.f32 %v54_v11, %v55_v12 }
  0x2c   :  { %51 = vadd.xlane.f32.xlu0 %v50_v13 }
  0x30   :  { %57 = vmax.xlane.f32.xlu0 %v56_v14 }
  0xb9   :  { %v52_v15 = vpop.xlane.xlu0 %51 }
  0xba   :  { %v53_v16 = vmul.f32 0.00390625, %v52_v15 }
  0xbc   :  { %v61_v20 = vmul.f32 %v60_v17, %v53_v16 }
  0xbd   :  { %v58_v19 = vpop.xlane.xlu0 %57 }
  0xbe   :  { %v64_v21 = vmul.f32 %v63_v18, %v58_v19 }
  0xc0   :  { %v65_v22 = vadd.f32 %v64_v21, %v61_v20 }
  0xc2   :  { %v100_v23 = vmul.f32 -1.442695, %v65_v22 }
  0xc4   :  { %106 = vpow2.f32 %v100_v23 }
  0xce   :  { %v107_v24 = vpop.eup %106 }
  0xcf   :  { %v69_v25 = vadd.f32 1.0, %v107_v24 }
  0xd1   :  { %108 = vrcp.f32 %v69_v25 }
  0xdb   :  { %v109_v30 = vpop.eup %108 }
  0xdc   :  { %v79_v31 = vrot.slane %v109_v30, %v78_v29 }
  0xde   :  { %v81_v32 = vmul.f32 %v79_v31, %v35_v5 }
  0xe0   :  { %82 = vst [vmem:[#allocation7] sm:$0xf] %v81_v32 }
  0xe1   :  { %153 = shalt.err (!%p150_p1)
}
  0xe2   :  { %s154_s8 = scalar_lea.hbm %s228_s2, 64 }
  0xe3   :  { %p155_p2 = scmp.ne.s32.totalorder %s228_s2, %s154_s8  ;;  %p158_p3 = scmp.lt.u32.totalorder %s154_s8, %s228_s2 }
  0xe5   :  { %p160_p4 = pnand %p158_p3, %p155_p2 }
  0xe7   :  { %163 = shalt.err (!%p160_p4)
}
  0xe8   :  { %92 = dma.vmem_to_hbm [thread:$0]  %s90_s4, 64, %s228_s2, [#allocation4]  }
  0xe9   :  { %168 = dma.done.wait [#allocation4], 64  }
  0xea   :  { %169 = vsyncadd [#allocation4], 4294967232 }
  0xeb   :  { %96 = vsyncpa [#allocation3], 1 }
  0xec   :  { %97 = vsyncpa [#allocation4], 1 }
  0xed   :  { %98 = vsyncpa [#allocation5], 1 }

</bundles_post_ra>
